<compile_context>
chip_gen: v7x
topology: tpu7x:2x2x1
jax: 0.10.0
libtpu: 0.0.40
codegen_flags: <defaults>
</compile_context>

<pallas_src>
import jax
import jax.numpy as jnp
from jax.experimental import pallas as pl
from jax.experimental.pallas import tpu as pltpu


def _self_attention_kernel(scale_ref, x_ref, mem_ref, mask_ref, out_ref,
                           m_sc, l_sc, acc_sc):
    """One (batch-block, Lm-tile) step of the flash-style attention.

    Block shapes:
      scale_ref (1, D)            dot_scale (row vector)
      x_ref     (Bb, Lq, D)       input (same block across all Lm steps)
      mem_ref   (Bb, Lt, D)       memory tile
      mask_ref  (Bb, 1, Lt)       mask tile (1 = keep, 0 = masked)
      out_ref   (Bb, Lq, 2D)      [input, attended] (resident across Lm steps)
      m_sc/l_sc (Bb, Lq, 1) f32   online-softmax running max / denominator
      acc_sc    (Bb, Lq, D) f32   online-softmax running numerator
    """
    k = pl.program_id(1)

    @pl.when(k == 0)
    def _():
        m_sc[...] = jnp.full_like(m_sc, -jnp.inf)
        l_sc[...] = jnp.zeros_like(l_sc)
        acc_sc[...] = jnp.zeros_like(acc_sc)

    x = x_ref[...]                                     # (Bb, Lq, D), input dtype
    mem = mem_ref[...]                                 # (Bb, Lt, D), input dtype
    scale = scale_ref[...].astype(x.dtype)             # (1, D)
    keep = mask_ref[...] > 0                           # (Bb, 1, Lt) bool

    # (x * scale) @ mem^T ; einsum contracts the shared last dim so no mem
    # transpose is materialized.  Scaling the (small) query tile is O(Lq*D)
    # VALU work per step -- negligible next to the O(Lq*Lt*D) MXU work.
    s = jnp.einsum("bqd,bkd->bqk", x * scale, mem,
                   preferred_element_type=jnp.float32)  # (Bb, Lq, Lt) f32

    # NOTE: input_dot (= input @ W^T) is uniform along the softmax axis and
    # cancels exactly under softmax -- intentionally omitted.
    att = jnp.where(keep, s, -1e30)                     # mask broadcast over Lq

    # Online (flash) softmax update; statistics in f32.
    m_prev = m_sc[...]
    m_new = jnp.maximum(m_prev, att.max(axis=-1, keepdims=True))
    alpha = jnp.exp(m_prev - m_new)
    p = jnp.exp(att - m_new)
    l_sc[...] = alpha * l_sc[...] + p.sum(axis=-1, keepdims=True)
    acc_sc[...] = alpha * acc_sc[...] + jnp.einsum(
        "bqk,bkd->bqd", p.astype(mem.dtype), mem,
        preferred_element_type=jnp.float32)
    m_sc[...] = m_new

    @pl.when(k == pl.num_programs(1) - 1)
    def _():
        attended = acc_sc[...] * pl.reciprocal(l_sc[...], approx=True)
        # In-kernel concatenation -> one full-width lane-dense store.
        out_ref[...] = jnp.concatenate(
            [x.astype(out_ref.dtype), attended.astype(out_ref.dtype)], axis=-1)


def _pick_lm_tile(lm):
    # Full Lm if small enough; otherwise the largest 128-aligned tile that
    # divides Lm evenly (keeps the mask / memory tiles lane-aligned).
    if lm <= 512:
        return lm
    for t in (512, 384, 256, 128):
        if lm % t == 0:
            return t
    # TODO(synk): ragged Lm (no 128-aligned divisor) falls back to a single tile.
    return lm


def _pick_batch_block(batch, bytes_per_batch, target_bytes=512 * 1024):
    # Batch enough elements per grid step to reach ~512 KiB tiles, but keep at
    # least 2 parallel grid steps so megacore / 2-TC chips (v7x) stay busy.
    best = 1
    for d in range(1, batch + 1):
        if batch % d:
            continue
        if batch >= 2 and batch // d < 2:
            break
        if d * bytes_per_batch <= target_bytes:
            best = d
    return best


def self_attention_pallas(inp, memory, mask, w, dot_scale, *,
                          block_b=None, block_lm=None):
    """Returns cat([input, output_one], -1), matching SelfAttention.forward.

    `w` (the nn.Linear(D, 1, bias=False) weight) is accepted for module parity
    but not used: input_dot shifts each softmax row by a constant and therefore
    has zero effect on the forward output (softmax shift invariance).
    """
    del w  # mathematically a no-op on the forward output
    B, Lq, D = inp.shape
    assert memory.shape[0] == B and memory.shape[2] == D, memory.shape
    Lm = memory.shape[1]
    assert mask.shape == (B, Lm), mask.shape

    mask3 = mask.astype(jnp.float32).reshape(B, 1, Lm)
    scale2 = dot_scale.reshape(1, D).astype(inp.dtype)

    if block_lm is None:
        block_lm = _pick_lm_tile(Lm)
    assert Lm % block_lm == 0, (Lm, block_lm)
    assert block_lm == Lm or block_lm % 128 == 0, block_lm  # lane alignment

    itemsize = jnp.dtype(inp.dtype).itemsize
    bytes_per_batch = (Lq * D + block_lm * D + 2 * Lq * D) * itemsize \
        + (Lq * (D + 2)) * 4
    if block_b is None:
        block_b = _pick_batch_block(B, bytes_per_batch)
    assert B % block_b == 0, (B, block_b)

    grid = (B // block_b, Lm // block_lm)

    return pl.pallas_call(
        _self_attention_kernel,
        out_shape=jax.ShapeDtypeStruct((B, Lq, 2 * D), inp.dtype),
        grid_spec=pltpu.PrefetchScalarGridSpec(
            num_scalar_prefetch=0,
            grid=grid,
            in_specs=[
                pl.BlockSpec((1, D), lambda b, k: (0, 0)),                     # dot_scale
                pl.BlockSpec((block_b, Lq, D), lambda b, k: (b, 0, 0)),        # input
                pl.BlockSpec((block_b, block_lm, D), lambda b, k: (b, k, 0)),  # memory
                pl.BlockSpec((block_b, 1, block_lm), lambda b, k: (b, 0, k)),  # mask
            ],
            out_specs=pl.BlockSpec((block_b, Lq, 2 * D), lambda b, k: (b, 0, 0)),
            scratch_shapes=[
                pltpu.VMEM((block_b, Lq, 1), jnp.float32),  # running max
                pltpu.VMEM((block_b, Lq, 1), jnp.float32),  # running denominator
                pltpu.VMEM((block_b, Lq, D), jnp.float32),  # running numerator
            ],
        ),
        compiler_params=pltpu.CompilerParams(
            dimension_semantics=("parallel", "arbitrary"),
            vmem_limit_bytes=32 * 1024 * 1024,
        ),
    )(scale2, inp, memory, mask3)


def self_attention_ref(inp, memory, mask, w, dot_scale):
    """Pure-JAX reference mirroring the PyTorch forward (keeps input_dot)."""
    input_dot = inp @ w.reshape(-1, 1)                          # (B, Lq, 1)
    cross_dot = jnp.einsum("bqd,bkd->bqk", inp * dot_scale, memory)
    att = input_dot + cross_dot - 1e30 * (1.0 - mask[:, None, :])
    weight_one = jax.nn.softmax(att, axis=-1)
    output_one = jnp.einsum("bqk,bkd->bqd", weight_one, memory)
    return jnp.concatenate([inp, output_one], axis=-1)


def _run_case(key, B, Lq, Lm, D, **kw):
    k1, k2, k3, k4, k5 = jax.random.split(key, 5)
    inp = jax.random.normal(k1, (B, Lq, D), dtype=jnp.float32)
    memory = jax.random.normal(k2, (B, Lm, D), dtype=jnp.float32)
    # mask: 1 = keep, 0 = masked out; keep at least one position per row.
    mask = (jax.random.uniform(k3, (B, Lm)) > 0.3).astype(jnp.float32)
    mask = mask.at[:, 0].set(1.0)

    bound = 1.0 / (D ** 0.5)
    w = jax.random.uniform(k4, (D,), minval=-bound, maxval=bound, dtype=jnp.float32)
    dot_scale = jax.random.uniform(k5, (D,), minval=0.0, maxval=bound,
                                   dtype=jnp.float32)

    out = jax.block_until_ready(
        self_attention_pallas(inp, memory, mask, w, dot_scale, **kw))
    ref = self_attention_ref(inp, memory, mask, w, dot_scale)

    assert out.shape == (B, Lq, 2 * D), out.shape
    # Tolerance accounts for the EUP approximate reciprocal in the softmax
    # normalization (and tiny fp differences from the cancelled input_dot term).
    err = float(jnp.max(jnp.abs(out - ref)))
    assert jnp.allclose(out, ref, atol=2e-3, rtol=2e-3), err


if __name__ == "__main__":
    key = jax.random.PRNGKey(0)
    k1, k2 = jax.random.split(key)
    # Small base case (shapes implied by the module): single Lm tile.
    _run_case(k1, B=2, Lq=8, Lm=8, D=32)
    # Exercises the Lm-tiled online-softmax (flash) path: 2 lane-aligned Lm tiles.
    _run_case(k2, B=2, Lq=16, Lm=256, D=64, block_lm=128)
    print("KERNEL_OK")
</pallas_src>

<mosaic_0001>
module attributes {stable_mosaic.version = 11 : i64} {
  func.func @_self_attention_kernel(%arg0: i32, %arg1: i32, %arg2: memref<1x32xf32, #tpu.memory_space<vmem>>, %arg3: memref<1x8x32xf32, #tpu.memory_space<vmem>>, %arg4: memref<1x8x32xf32, #tpu.memory_space<vmem>>, %arg5: memref<1x1x8xf32, #tpu.memory_space<vmem>>, %arg6: memref<1x8x64xf32, #tpu.memory_space<vmem>>, %arg7: memref<1x8x1xf32, #tpu.memory_space<vmem>>, %arg8: memref<1x8x1xf32, #tpu.memory_space<vmem>>, %arg9: memref<1x8x32xf32, #tpu.memory_space<vmem>>) attributes {dimension_semantics = [#tpu.dimension_semantics<parallel>, #tpu.dimension_semantics<arbitrary>], iteration_bounds = array<i64: 2, 1>, scalar_prefetch = 0 : i64, scratch_operands = 3 : i64, tpu.core_type = #tpu.core_type<tc>, window_params = [{pipeline_mode = #tpu.pipeline_mode<synchronous>, transform_indices = @transform_0, window_bounds = array<i64: 1, 32>}, {transform_indices = @transform_1, window_bounds = array<i64: 1, 8, 32>}, {transform_indices = @transform_2, window_bounds = array<i64: 1, 8, 32>}, {transform_indices = @transform_3, window_bounds = array<i64: 1, 1, 8>}, {transform_indices = @transform_4, window_bounds = array<i64: 1, 8, 64>}]} {
    %c0_i32 = arith.constant 0 : i32
    %0 = arith.cmpi eq, %arg1, %c0_i32 : i32
    %1 = arith.extui %0 : i1 to i32
    %c0_i32_0 = arith.constant 0 : i32
    %2 = arith.cmpi ne, %1, %c0_i32_0 : i32
    scf.if %2 {
      %cst_36 = arith.constant 0xFF800000 : f32
      %42 = vector.broadcast %cst_36 : f32 to vector<1x8x1xf32>
      %c0_37 = arith.constant 0 : index
      %c0_38 = arith.constant 0 : index
      %c0_39 = arith.constant 0 : index
      %43 = vector.load %arg7[%c0_37, %c0_38, %c0_39] : memref<1x8x1xf32, #tpu.memory_space<vmem>>, vector<1x8x1xf32>
      tpu.vector_store %arg7[%c0_37, %c0_38, %c0_39], %42 {strides = array<i32>} : memref<1x8x1xf32, #tpu.memory_space<vmem>>, vector<1x8x1xf32>,
      %cst_40 = arith.constant 0.000000e+00 : f32
      %44 = vector.broadcast %cst_40 : f32 to vector<1x8x1xf32>
      %c0_41 = arith.constant 0 : index
      %c0_42 = arith.constant 0 : index
      %c0_43 = arith.constant 0 : index
      %45 = vector.load %arg8[%c0_41, %c0_42, %c0_43] : memref<1x8x1xf32, #tpu.memory_space<vmem>>, vector<1x8x1xf32>
      tpu.vector_store %arg8[%c0_41, %c0_42, %c0_43], %44 {strides = array<i32>} : memref<1x8x1xf32, #tpu.memory_space<vmem>>, vector<1x8x1xf32>,
      %cst_44 = arith.constant 0.000000e+00 : f32
      %46 = vector.broadcast %cst_44 : f32 to vector<1x8x32xf32>
      %c0_45 = arith.constant 0 : index
      %c0_46 = arith.constant 0 : index
      %c0_47 = arith.constant 0 : index
      %47 = vector.load %arg9[%c0_45, %c0_46, %c0_47] : memref<1x8x32xf32, #tpu.memory_space<vmem>>, vector<1x8x32xf32>
      tpu.vector_store %arg9[%c0_45, %c0_46, %c0_47], %46 {strides = array<i32>} : memref<1x8x32xf32, #tpu.memory_space<vmem>>, vector<1x8x32xf32>,
    } else {
    }
    %c0 = arith.constant 0 : index
    %c0_1 = arith.constant 0 : index
    %c0_2 = arith.constant 0 : index
    %3 = vector.load %arg3[%c0, %c0_1, %c0_2] : memref<1x8x32xf32, #tpu.memory_space<vmem>>, vector<1x8x32xf32>
    %c0_3 = arith.constant 0 : index
    %c0_4 = arith.constant 0 : index
    %c0_5 = arith.constant 0 : index
    %4 = vector.load %arg4[%c0_3, %c0_4, %c0_5] : memref<1x8x32xf32, #tpu.memory_space<vmem>>, vector<1x8x32xf32>
    %c0_6 = arith.constant 0 : index
    %c0_7 = arith.constant 0 : index
    %5 = vector.load %arg2[%c0_6, %c0_7] : memref<1x32xf32, #tpu.memory_space<vmem>>, vector<1x32xf32>
    %c0_8 = arith.constant 0 : index
    %c0_9 = arith.constant 0 : index
    %c0_10 = arith.constant 0 : index
    %6 = vector.load %arg5[%c0_8, %c0_9, %c0_10] : memref<1x1x8xf32, #tpu.memory_space<vmem>>, vector<1x1x8xf32>
    %cst = arith.constant 0.000000e+00 : f32
    %7 = vector.broadcast %cst : f32 to vector<1x1x8xf32>
    %8 = arith.cmpf ogt, %6, %7 : vector<1x1x8xf32>
    %9 = vector.shape_cast %5 : vector<1x32xf32> to vector<1x1x32xf32>
    %10 = vector.broadcast %9 : vector<1x1x32xf32> to vector<1x8x32xf32>
    %11 = arith.mulf %3, %10 : vector<1x8x32xf32>
    "tpu.trace_start"() <{level = 10 : i32, message = "bqd,bkd->bqk"}> : () -> ()
    %cst_11 = arith.constant dense<0.000000e+00> : vector<1x8x8xf32>
    %12 = tpu.matmul %11, %4, %cst_11 {dimension_numbers = #tpu.dot_dimension_numbers<[2], [2], [1], [1], [0, 0, 0, 1, 1, 1], [0], [0]>} : vector<1x8x32xf32>, vector<1x8x32xf32>, vector<1x8x8xf32> -> vector<1x8x8xf32>
    %cst_12 = arith.constant -1.000000e+30 : f32
    "tpu.trace_stop"() : () -> ()
    %13 = vector.shape_cast %8 : vector<1x1x8xi1> to vector<1x1x8xi1>
    %14 = vector.broadcast %13 : vector<1x1x8xi1> to vector<1x8x8xi1>
    %15 = vector.broadcast %cst_12 : f32 to vector<1x8x8xf32>
    %16 = arith.select %14, %12, %15 : vector<1x8x8xi1>, vector<1x8x8xf32>
    %c0_13 = arith.constant 0 : index
    %c0_14 = arith.constant 0 : index
    %c0_15 = arith.constant 0 : index
    %17 = vector.load %arg7[%c0_13, %c0_14, %c0_15] : memref<1x8x1xf32, #tpu.memory_space<vmem>>, vector<1x8x1xf32>
    %cst_16 = arith.constant dense<0xFF800000> : vector<1x8xf32>
    %18 = vector.multi_reduction <maximumf>, %16, %cst_16 [2] : vector<1x8x8xf32> to vector<1x8xf32>
    %19 = vector.shape_cast %18 : vector<1x8xf32> to vector<1x8x1xf32>
    %20 = arith.maximumf %17, %19 : vector<1x8x1xf32>
    %21 = arith.subf %17, %20 : vector<1x8x1xf32>
    %22 = math.exp %21 : vector<1x8x1xf32>
    %23 = vector.broadcast %20 : vector<1x8x1xf32> to vector<1x8x8xf32>
    %24 = arith.subf %16, %23 : vector<1x8x8xf32>
    %25 = math.exp %24 : vector<1x8x8xf32>
    %c0_17 = arith.constant 0 : index
    %c0_18 = arith.constant 0 : index
    %c0_19 = arith.constant 0 : index
    %26 = vector.load %arg8[%c0_17, %c0_18, %c0_19] : memref<1x8x1xf32, #tpu.memory_space<vmem>>, vector<1x8x1xf32>
    %27 = arith.mulf %22, %26 : vector<1x8x1xf32>
    %cst_20 = arith.constant dense<0.000000e+00> : vector<1x8xf32>
    %28 = vector.multi_reduction <add>, %25, %cst_20 [2] : vector<1x8x8xf32> to vector<1x8xf32>
    %29 = vector.shape_cast %28 : vector<1x8xf32> to vector<1x8x1xf32>
    %30 = arith.addf %27, %29 : vector<1x8x1xf32>
    %c0_21 = arith.constant 0 : index
    %c0_22 = arith.constant 0 : index
    %c0_23 = arith.constant 0 : index
    %31 = vector.load %arg8[%c0_21, %c0_22, %c0_23] : memref<1x8x1xf32, #tpu.memory_space<vmem>>, vector<1x8x1xf32>
    tpu.vector_store %arg8[%c0_21, %c0_22, %c0_23], %30 {strides = array<i32>} : memref<1x8x1xf32, #tpu.memory_space<vmem>>, vector<1x8x1xf32>,
    %c0_24 = arith.constant 0 : index
    %c0_25 = arith.constant 0 : index
    %c0_26 = arith.constant 0 : index
    %32 = vector.load %arg9[%c0_24, %c0_25, %c0_26] : memref<1x8x32xf32, #tpu.memory_space<vmem>>, vector<1x8x32xf32>
    %33 = vector.broadcast %22 : vector<1x8x1xf32> to vector<1x8x32xf32>
    %34 = arith.mulf %33, %32 : vector<1x8x32xf32>
    "tpu.trace_start"() <{level = 10 : i32, message = "bqk,bkd->bqd"}> : () -> ()
    %cst_27 = arith.constant dense<0.000000e+00> : vector<1x8x32xf32>
    %35 = tpu.matmul %25, %4, %cst_27 {dimension_numbers = #tpu.dot_dimension_numbers<[2], [1], [1], [2], [0, 0, 0, 1, 1, 2], [0], [0]>} : vector<1x8x8xf32>, vector<1x8x32xf32>, vector<1x8x32xf32> -> vector<1x8x32xf32>
    "tpu.trace_stop"() : () -> ()
    %36 = arith.addf %34, %35 : vector<1x8x32xf32>
    %c0_28 = arith.constant 0 : index
    %c0_29 = arith.constant 0 : index
    %c0_30 = arith.constant 0 : index
    %37 = vector.load %arg9[%c0_28, %c0_29, %c0_30] : memref<1x8x32xf32, #tpu.memory_space<vmem>>, vector<1x8x32xf32>
    tpu.vector_store %arg9[%c0_28, %c0_29, %c0_30], %36 {strides = array<i32>} : memref<1x8x32xf32, #tpu.memory_space<vmem>>, vector<1x8x32xf32>,
    %c0_31 = arith.constant 0 : index
    %c0_32 = arith.constant 0 : index
    %c0_33 = arith.constant 0 : index
    %38 = vector.load %arg7[%c0_31, %c0_32, %c0_33] : memref<1x8x1xf32, #tpu.memory_space<vmem>>, vector<1x8x1xf32>
    tpu.vector_store %arg7[%c0_31, %c0_32, %c0_33], %20 {strides = array<i32>} : memref<1x8x1xf32, #tpu.memory_space<vmem>>, vector<1x8x1xf32>,
    %c0_i32_34 = arith.constant 0 : i32
    %39 = arith.cmpi eq, %arg1, %c0_i32_34 : i32
    %40 = arith.extui %39 : i1 to i32
    %c0_i32_35 = arith.constant 0 : i32
    %41 = arith.cmpi ne, %40, %c0_i32_35 : i32
    scf.if %41 {
      %c0_36 = arith.constant 0 : index
      %c0_37 = arith.constant 0 : index
      %c0_38 = arith.constant 0 : index
      %42 = vector.load %arg9[%c0_36, %c0_37, %c0_38] : memref<1x8x32xf32, #tpu.memory_space<vmem>>, vector<1x8x32xf32>
      %c0_39 = arith.constant 0 : index
      %c0_40 = arith.constant 0 : index
      %c0_41 = arith.constant 0 : index
      %43 = vector.load %arg8[%c0_39, %c0_40, %c0_41] : memref<1x8x1xf32, #tpu.memory_space<vmem>>, vector<1x8x1xf32>
      %44 = tpu.reciprocal %43 {approx = true} : vector<1x8x1xf32> -> vector<1x8x1xf32>
      %45 = vector.broadcast %44 : vector<1x8x1xf32> to vector<1x8x32xf32>
      %46 = arith.mulf %42, %45 : vector<1x8x32xf32>
      %47 = tpu.concatenate %3, %46 in 2 : vector<1x8x32xf32>, vector<1x8x32xf32> -> vector<1x8x64xf32>
      %c0_42 = arith.constant 0 : index
      %c0_43 = arith.constant 0 : index
      %c0_44 = arith.constant 0 : index
      %48 = vector.load %arg6[%c0_42, %c0_43, %c0_44] : memref<1x8x64xf32, #tpu.memory_space<vmem>>, vector<1x8x64xf32>
      tpu.vector_store %arg6[%c0_42, %c0_43, %c0_44], %47 {strides = array<i32>} : memref<1x8x64xf32, #tpu.memory_space<vmem>>, vector<1x8x64xf32>,
    } else {
    }
    return
  }
  func.func @transform_0(%arg0: i32, %arg1: i32) -> (i32, i32) {
    %c0_i32 = arith.constant 0 : i32
    %c0_i32_0 = arith.constant 0 : i32
    %c0_i32_1 = arith.constant 0 : i32
    return %c0_i32, %c0_i32_0 : i32, i32
  }
  func.func @transform_1(%arg0: i32, %arg1: i32) -> (i32, i32, i32) {
    %c0_i32 = arith.constant 0 : i32
    %c0_i32_0 = arith.constant 0 : i32
    %c0_i32_1 = arith.constant 0 : i32
    return %arg0, %c0_i32, %c0_i32_0 : i32, i32, i32
  }
  func.func @transform_2(%arg0: i32, %arg1: i32) -> (i32, i32, i32) {
    %c0_i32 = arith.constant 0 : i32
    %c0_i32_0 = arith.constant 0 : i32
    return %arg0, %arg1, %c0_i32 : i32, i32, i32
  }
  func.func @transform_3(%arg0: i32, %arg1: i32) -> (i32, i32, i32) {
    %c0_i32 = arith.constant 0 : i32
    %c0_i32_0 = arith.constant 0 : i32
    return %arg0, %c0_i32, %arg1 : i32, i32, i32
  }
  func.func @transform_4(%arg0: i32, %arg1: i32) -> (i32, i32, i32) {
    %c0_i32 = arith.constant 0 : i32
    %c0_i32_0 = arith.constant 0 : i32
    %c0_i32_1 = arith.constant 0 : i32
    return %arg0, %c0_i32, %c0_i32_0 : i32, i32, i32
  }
}

</mosaic_0001>

<bundles_post_ra>
// kernel: tpu_custom_call.1
= control target key start
LH: loop header
LB: loop body
LE: loop exit
PB: predicated region body
PF: predicated region fallthrough
CT: control target
= control target key end

     0   :  { %s1283_s0 = inlined_call_operand.hbm [shape: f32[1,32], index: 0, kind: input, shape index: {}]   ;;  %s1284_s1 = inlined_call_operand.hbm [shape: f32[2,8,32], index: 1, kind: input, shape index: {}]   ;;  %s1285_s2 = inlined_call_operand.hbm [shape: f32[2,8,32], index: 2, kind: input, shape index: {}]   ;;  %s1286_s3 = inlined_call_operand.vmem [shape: f32[2,1,8], index: 3, kind: input, shape index: {}]   ;;  %s1287_s4 = inlined_call_operand.hbm [shape: f32[2,8,64], index: 4, kind: output, shape index: {}]  }
   0x1   :  { %1293 = sst [smem:[#allocation15_spill]] %s1284_s1 }
   0x2   :  { %9 = vsyncpa [#allocation6], 0 }
   0x3   :  { %10 = vsyncpa [#allocation9], 0 }
   0x4   :  { %12 = vsyncpa [#allocation9 + $0x1], 0 }
   0x5   :  { %13 = vsyncpa [#allocation7], 0 }
   0x6   :  { %15 = vsyncpa [#allocation7 + $0x1], 0  ;;  %s1006_s15 = smov 0   ;;  %s1008_s16 = smov 0  }
   0x7   :  { %s1010_s17 = smov 0   ;;  %s1012_s18 = smov 0  }
   0x8   :  { %s1014_s19 = smov 0   ;;  %s1016_s20 = smov 0  }
   0x9 LB: > { %s33_s21 = sadd.s32 1, %s966_s19  ;;  %s61_s22 = sadd.s32 1, %s958_s17  ;;  %s970_s20 = sphi %s1016_s20, %s21_s20   ;;  %s966_s19 = sphi %s1014_s19, %s1315_s19   ;;  %s962_s18 = sphi %s1012_s18, %s1314_s18   ;;  %s958_s17 = sphi %s1010_s17, %s1313_s17   ;;  %s954_s16 = sphi %s1008_s16, %s1312_s16   ;;  %s950_s15 = sphi %s1006_s15, %s1311_s15  }
   0xa   : > { %p35_p0 = scmp.ge.s32.totalorder %s33_s21, 2  ;;  %p68_p1 = scmp.ne.s32.totalorder %s958_s17, %s954_s16 }
   0xb   : > { %p69_p2 = scmp.eq.s32.totalorder %s970_s20, 0  ;;  %p731_p5 = scmp.lt.s32.totalorder %s970_s20, 2 }
   0xc   : > { %s1317_s21 = smov (%p35_p0, %s33_s21), 0  ;;  %s191_s24 = sand.u32 1, %s970_s20  }
   0xd   : > { %p70_p4 = por %p69_p2, %p68_p1  ;;  %s58_s23 = ssub.s32 %s966_s19, %s1317_s21 }
   0xe   : > { %p59_p6 = scmp.eq.s32.totalorder %s58_s23, 0  ;;  %s193_s25 = sand.u32 1, %s958_s17  }
   0xf   : > { %s675_s26 = sshll.u32 %s966_s19, 7  ;;  %s1056_s28 = sshll.u32 %s193_s25, 3 }
  0x10   : > { %s1054_s27 = scalar_select %p59_p6, %s958_s17, %s61_s22  }
  0x11   : > { %s1294_s1 = sld [smem:[#allocation15_spill]]  ;;  %p1065_p7 = pnand %p731_p5, %p70_p4 }
  0x12   : > { %s195_s7 = scalar_lea.vmem [#allocation8], %s1056_s28  ;;  %s1072_s9 = scalar_lea.sflag [#allocation9], %s191_s24 }
  0x13   : > { %s202_s8 = sshll.u32 %s195_s7, 4  ;;  %p798_p9 = pneg %p1065_p7  ;;  %s1070_s8 = int_to_ptr.vmem [resolvable:$true] %s202_s8 }
  0x17   : > { %s1063_s5 = scalar_lea.hbm %s1294_s1, %s675_s26  ;;  %s801_s13 = scalar_lea.hbm %s1294_s1, 256 }
  0x18   : > { %s796_s10 = scalar_lea.hbm %s1063_s5, 128  ;;  %p802_p12 = scmp.lt.u32.totalorder %s1063_s5, %s1294_s1 }
  0x19   : > { %p797_p8 = scmp.ne.s32.totalorder %s1063_s5, %s796_s10  ;;  %p803_p13 = scmp.lt.u32.totalorder %s801_s13, %s796_s10 }
  0x1a   : > { %p805_p2 = scmp.lt.u32.totalorder %s796_s10, %s1063_s5 }
  0x1b   : > { %p799_p10 = pnand %p798_p9, %p797_p8  ;;  %p804_p0 = por %p803_p13, %p802_p12 }
  0x1d   : > { %p800_p11 = pneg %p799_p10  ;;  %p806_p4 = por %p805_p2, %p804_p0 }
  0x1f   : > { %p807_p5 = pnand %p806_p4, %p800_p11 }
  0x21   : > { %810 = shalt.err (!%p807_p5)
}
  0x22   : > { %s811_s23 = scalar_lea.vmem %s1070_s8, 128  ;;  %s972_s24 = smov [#allocation8]  }
  0x23   : > { %p812_p6 = scmp.ne.s32.totalorder %s1070_s8, %s811_s23  ;;  %s816_s25 = sshll.u32 %s972_s24, 4  ;;  %s817_s25 = int_to_ptr.vmem [resolvable:$false] %s816_s25 }
  0x24   : > { %s818_s29 = scalar_lea.vmem %s817_s25, 256  ;;  %p819_p3 = scmp.lt.s32.totalorder %s1070_s8, %s817_s25 }
  0x25   : > { %p814_p8 = pnand %p812_p6, %p798_p9  ;;  %p820_p12 = scmp.lt.s32.totalorder %s818_s29, %s811_s23 }
  0x27   : > { %p815_p10 = pneg %p814_p8  ;;  %p821_p13 = por %p820_p12, %p819_p3 }
  0x29   : > { %p822_p0 = pnand %p821_p13, %p815_p10 }
  0x2b   : > { %825 = shalt.err (!%p822_p0)
}
  0x2c   : > { %722 = dma.hbm_to_vmem [thread:$0]  (!%p1065_p7), %s1063_s5, 128, %s1070_s8, %s1072_s9  }
  0x2d   : > { %s1101_s30 = sadd.s32 4294967295, %s970_s20   ;;  %s670_s7 = sadd.s32 4294967294, %s970_s20  }
  0x2e   : > { %p74_p3 = scmp.ne.s32.totalorder %s954_s16, %s950_s15  ;;  %p1288_p11 = scmp.eq.s32.totalorder %s1101_s30, 0 }
  0x2f   : > { %p154_p2 = scmp.eq.s32.totalorder %s1101_s30, 1  ;;  %p160_p4 = scmp.eq.s32.totalorder %s670_s7, 1 }
  0x30   : > { %p671_p5 = scmp.ge.s32.totalorder %s970_s20, 1  ;;  %p1111_p6 = por %p1288_p11, %p74_p3 }
  0x31   : > { %p1118_p8 = por %p154_p2, %p68_p1  ;;  %p1122_p10 = por %p160_p4, %p74_p3 }
  0x32   : > { %s1296_s10 = scalar_select %p1111_p6, 1, 0 }
  0x33   : > { %s1297_s5 = scalar_select %p1118_p8, 1, 0 }
  0x34   : > { %s1298_s8 = scalar_select %p1122_p10, 1, 0 }
  0x35   : > { %p167_p12 = scmp.lt.s32.totalorder %s970_s20, 3  ;;  %s1132_s13 = scalar_lea.hbm %s1285_s2, %s675_s26 }
  0x36   : > { %s973_s22 = smov [#allocation5]   ;;  %s213_s24 = scalar_lea.vmem [#allocation10], %s1056_s28 }
  0x37   : > { %p1134_p13 = pnand %p671_p5, %p167_p12  ;;  %s1138_s23 = sshll.u32 %s973_s22, 4  ;;  %s181_s23 = int_to_ptr.vmem [resolvable:$true] %s1138_s23 }
  0x38   : > { %s221_s25 = sshll.u32 %s213_s24, 4  ;;  %s826_s29 = scalar_lea.hbm %s1132_s13, 128  ;;  %s222_s25 = int_to_ptr.vmem [resolvable:$true] %s221_s25 }
  0x39   : > { %s1299_s14 = scalar_select %p1134_p13, 1, 0 }
  0x3a   : > { %p827_p0 = scmp.ne.s32.totalorder %s1132_s13, %s826_s29  ;;  %s831_s11 = scalar_lea.hbm %s1285_s2, 256 }
  0x3b   : > { %p832_p4 = scmp.lt.u32.totalorder %s1132_s13, %s1285_s2  ;;  %p833_p5 = scmp.lt.u32.totalorder %s831_s11, %s826_s29 }
  0x3c   : > { %p829_p3 = pnand %p827_p0, %p798_p9  ;;  %p835_p11 = scmp.lt.u32.totalorder %s826_s29, %s1132_s13 }
  0x3d   : > { %p834_p12 = por %p833_p5, %p832_p4 }
  0x3e   : > { %p830_p2 = pneg %p829_p3 }
  0x3f   : > { %p836_p10 = por %p835_p11, %p834_p12 }
  0x41   : > { %p837_p1 = pnand %p836_p10, %p830_p2 }
  0x43   : > { %840 = shalt.err (!%p837_p1)
}
  0x44   : > { %s841_s28 = scalar_lea.vmem %s222_s25, 128  ;;  %s974_s22 = smov [#allocation10]  }
  0x45   : > { %p842_p8 = scmp.ne.s32.totalorder %s222_s25, %s841_s28  ;;  %s846_s24 = sshll.u32 %s974_s22, 4  ;;  %s847_s24 = int_to_ptr.vmem [resolvable:$false] %s846_s24 }
  0x46   : > { %s848_s26 = scalar_lea.vmem %s847_s24, 256  ;;  %p849_p6 = scmp.lt.s32.totalorder %s222_s25, %s847_s24 }
  0x47   : > { %p844_p0 = pnand %p842_p8, %p798_p9  ;;  %p850_p13 = scmp.lt.s32.totalorder %s848_s26, %s841_s28 }
  0x49   : > { %p845_p3 = pneg %p844_p0  ;;  %p851_p4 = por %p850_p13, %p849_p6 }
  0x4b   : > { %p852_p5 = pnand %p851_p4, %p845_p3 }
  0x4d   : > { %855 = shalt.err (!%p852_p5)
}
  0x4e   : > { %725 = dma.hbm_to_vmem [thread:$0]  (!%p1065_p7), %s1132_s13, 128, %s222_s25, %s1072_s9  }
  0x4f   : > { %p1300_p9 = scmp.eq.s32.totalorder %s1101_s30, 0  ;;  %p1301_p11 = scmp.ne.s32.totalorder %s1299_s14, 0 }
  0x50   : > { %s856_s11 = scalar_lea.hbm %s1283_s0, 16 }
  0x51   : > { %p1302_p8 = pneg %p1301_p11  ;;  %p857_p6 = scmp.ne.s32.totalorder %s1283_s0, %s856_s11 }
  0x52   : > { %p863_p2 = scmp.lt.u32.totalorder %s856_s11, %s1283_s0 }
  0x53   : > { %p1169_p10 = pnand %p1302_p8, %p1300_p9 }
  0x55   : > { %p858_p13 = pneg %p1169_p10 }
  0x57   : > { %p859_p7 = pnand %p858_p13, %p857_p6 }
  0x59   : > { %p860_p1 = pneg %p859_p7 }
  0x5b   : > { %p865_p12 = pnand %p863_p2, %p860_p1 }
  0x5d   : > { %868 = shalt.err (!%p865_p12)
}
  0x5e   : > { %s869_s25 = scalar_lea.vmem %s181_s23, 16  ;;  %s876_s28 = scalar_lea.vmem %s181_s23, 32 }
  0x5f   : > { %p870_p0 = scmp.ne.s32.totalorder %s181_s23, %s869_s25  ;;  %p877_p5 = scmp.lt.s32.totalorder %s181_s23, %s181_s23 }
  0x60   : > { %p878_p9 = scmp.lt.s32.totalorder %s876_s28, %s869_s25 }
  0x61   : > { %p872_p3 = pnand %p870_p0, %p858_p13 }
  0x62   : > { %p879_p8 = por %p878_p9, %p877_p5 }
  0x63   : > { %p873_p4 = pneg %p872_p3 }
  0x65   : > { %p880_p11 = pnand %p879_p8, %p873_p4 }
  0x67   : > { %883 = shalt.err (!%p880_p11)
}
  0x68   : > { %718 = dma.hbm_to_vmem [thread:$0]  (!%p1169_p10), %s1283_s0, 16, %s181_s23, [#allocation6]  }
  0x69   : > { %p1304_p6 = scmp.ne.s32.totalorder %s1299_s14, 0 }
  0x6a   : > { %p1305_p7 = scmp.eq.s32.totalorder (!%p1304_p6), %s1101_s30, 0 }
  0x6b   : > { %239 = sbr.rel (%p1304_p6) target bundleno = 1051 (0x41b), region = 36 }
  0x72   : > { %937 = dma.done.wait (%p1305_p7), [#allocation6], 16   ;;  %p1306_p13 = pmov %p1305_p7 }
  0x73   : > { %s245_s26 = sand.u32 1, %s1101_s30   ;;  %s247_s29 = sand.u32 1, %s954_s16  }
  0x74   : > { %939 = vsyncadd (%p1306_p13), [#allocation6], 4294967280  ;;  %s1199_s1 = sshll.u32 %s247_s29, 3  ;;  %s246_s23 = scalar_lea.sflag [#allocation9], %s245_s26 }
  0x75   : > { %s249_s7 = scalar_lea.vmem [#allocation8], %s1199_s1  ;;  %p1307_p11 = scmp.ne.s32.totalorder %s1296_s10, 0 }
  0x77   : > { %941 = dma.done.wait (%p1307_p11), %s246_s23, 256  }
  0x78   : > { %943 = vsyncadd (%p1307_p11), %s246_s23, 4294967040  ;;  %vm307_vm0 = vcmask 261120   ;;  %v975_v0 = vmov 0.0   ;;  %vm976_vm1 = vmmov 0   ;;  %s258_s30 = scalar_lea.vmem [#allocation10], %s1199_s1  ;;  %v1208_v2 = vld [vmem:[%s249_s7] sm:$0xff]  ;;  %v399_v7 = vlaneseq }
  0x79   : > { %695 = vmatprep.subr.mxu0 %v975_v0  ;;  %308 = vst.msk [vmem:[#allocation4] sm:$0xff] %vm307_vm0, %v975_v0  ;;  %697 = vmatprep.mubr.msk.f32.mxu0 %vm976_vm1, %v975_v0  ;;  %v310_v1 = vld [vmem:[%s258_s30] sm:$0xff]  ;;  %v977_v5 = vmov 0   ;;  %vm304_vm2 = vcmask 7168   ;;  %v978_v6 = vmov -inf   ;;  %p294_p10 = scmp.lt.s32.totalorder %s962_s18, 1 }
  0x7a   : > { %700 = vmatprep.subr.mxu1 %v975_v0  ;;  %702 = vmatprep.mubr.msk.f32.mxu1 %vm976_vm1, %v975_v0  ;;  %v683_v3 = vld [vmem:[#allocation5] ss:$0 sm:$0xff]  ;;  %305 = vst.msk [vmem:[#allocation2] sm:$0xff] %vm304_vm2, %v978_v6  ;;  %306 = vst.msk [vmem:[#allocation3] sm:$0xff] %vm304_vm2, %v975_v0  ;;  %v400_v9 = vshrl.u32 %v399_v7, 7  ;;  %vm406_vm5 = vcmask 64512  }
  0x7b   : > { %696 = vmatpush3.xpose.msk.msra.mxu0 %vm307_vm0, %v310_v1  ;;  %v320_v4 = vmul.f32 %v683_v3, %v1208_v2  ;;  %701 = vmatpush3.msra.mxu1 %v310_v1  ;;  %s295_s10 = scalar_select %p294_p10, %s962_s18, 1  ;;  %vm530_vm6 = vcmask 523264  }
  0x7c   : > { %788 = vset.pattern.permute.xlu0 %v977_v5  ;;  %789 = vset.pattern.permute.xlu1 %v977_v5  ;;  %v401_v10 = vsub.s32 0, %v400_v9  ;;  %s979_s12 = smov 32   ;;  %s688_s9 = sshll.u32 %s962_s18, 7 }
  0x7d   : > { %s299_s6 = scalar_lea.vmem %s1286_s3, %s295_s10  ;;  %s293_s13 = scalar_lea.vmem [#allocation11], %s1199_s1 }
  0x7e   : > { %698 = vmatmul.mubr.msk.f32.vlgmr.msra.gmra.mrb[0].mxu0 %vm307_vm0, %v320_v4  ;;  %v312_v8 = vld [vmem:[%s299_s6] sm:$0x1]  ;;  %s546_s25 = sshll.u32 %s293_s13, 4  ;;  %s1231_s24 = scalar_lea.hbm %s1287_s4, %s688_s9  ;;  %s1233_s25 = int_to_ptr.vmem [resolvable:$true] %s546_s25 }
  0x7f   : > { %vm313_vm3 = vcmp.gt.f32.partialorder %v312_v8, 0.0  ;;  %s533_s18 = scalar_lea.sflag [#allocation7], %s247_s29  ;;  %s884_s26 = scalar_lea.vmem %s1233_s25, 128 }
  0x80   : > { %v398_v11 = vsel %vm313_vm3, 1, %v977_v5  ;;  %v430_v34 = vld [vmem:[#allocation4] sm:$0xff]  ;;  %p885_p1 = scmp.ne.s32.totalorder %s1233_s25, %s884_s26  ;;  %p1308_p2 = scmp.ne.s32.totalorder %s1297_s5, 0 }
  0x81   : > { %v402_v12 = vrot.slane %v398_v11, %v401_v10  ;;  %v405_v17 = vld [vmem:[#allocation2] sm:$0xff]  ;;  %v422_v28 = vld [vmem:[#allocation3] sm:$0xff]  ;;  %s980_s1 = smov [#allocation11]  }
  0x82   : > { %p886_p12 = pnand %p885_p1, %p1308_p2  ;;  %s888_s23 = sshll.u32 %s980_s1, 4  ;;  %s889_s23 = int_to_ptr.vmem [resolvable:$false] %s888_s23 }
  0x83   : > { %vm403_vm4 = vcmp.eq.s32.totalorder %v402_v12, 1  ;;  %s890_s7 = scalar_lea.vmem %s889_s23, 256  ;;  %p891_p3 = scmp.lt.s32.totalorder %s1233_s25, %s889_s23 }
  0x84   : > { %p887_p0 = pneg %p886_p12  ;;  %p892_p4 = scmp.lt.s32.totalorder %s890_s7, %s884_s26 }
  0x86   : > { %p893_p5 = por %p892_p4, %p891_p3 }
  0x88   : > { %p894_p9 = pnand %p893_p5, %p887_p0 }
 0x151   : > { %v394_v13 = vpop.f32.mrb[0].mxu0 }
 0x152   : > { %v404_v14 = vsel %vm403_vm4, %v394_v13, -1e+30  ;;  %v699_v15 = vpop.f32.mrb[1].mxu0 }
 0x153   : > { %v407_v16 = vsel %vm406_vm5, %v404_v14, -inf }
 0x154   : > { %408 = vmax.xlane.f32.xlu0 %v407_v16 }
 0x1e1   : > { %v409_v18 = vpop.xlane.xlu0 %408 }
 0x1e2   : > { %v410_v19 = vmax.f32 %v405_v17, %v409_v18 }
 0x1e4   : > { %v411_v20 = vsub.f32 %v405_v17, %v410_v19  ;;  %512 = vst.msk [vmem:[#allocation2] sm:$0xff] %vm304_vm2, %v410_v19  ;;  %416 = vperm.xlu0 %788, %v410_v19  }
 0x1e6   : > { %v412_v26 = vmul.f32 1.442695, %v411_v20 }
 0x263   : > { %v417_v21 = vpop.permute.xlu0 %416 }
 0x264   : > { %v419_v22 = vsub.f32 %v404_v14, %v417_v21 }
 0x266   : > { %v420_v23 = vmul.f32 1.442695, %v419_v22 }
 0x268   : > { %790 = vpow2.f32 %v420_v23 }
 0x269   : > { %792 = vpow2.f32 %v412_v26 }
 0x272   : > { %v791_v24 = vpop.eup %790 }
 0x273   : > { %703 = vmatmul.mubr.msk.f32.vlgmr.msra.gmra.mrb[0].mxu1 %vm406_vm5, %v791_v24  ;;  %v424_v25 = vsel %vm406_vm5, %v791_v24, 0.0  ;;  %v793_v27 = vpop.eup %792 }
 0x274   : > { %425 = vadd.xlane.f32.xlu1 %v424_v25  ;;  %v423_v29 = vmul.f32 %v793_v27, %v422_v28 }
 0x285   : > { %433 = vperm.xlu1 %789, %v793_v27  }
 0x301   : > { %v426_v30 = vpop.xlane.xlu1 %425 }
 0x302   : > { %v427_v31 = vadd.f32 %v426_v30, %v423_v29 }
 0x304   : > { %429 = vst.msk [vmem:[#allocation3] sm:$0xff] %vm304_vm2, %v427_v31 }
 0x305   : > { %v434_v35 = vpop.permute.xlu1 %433 }
 0x306   : > { %v436_v36 = vmul.f32 %v434_v35, %v430_v34 }
 0x30b   : > { %v517_v32 = vld [vmem:[#allocation3] sm:$0xff] }
 0x30c   : > { %794 = vrcp.f32 %v517_v32 }
 0x316   : > { %v795_v33 = vpop.eup %794 }
 0x317   : > { %521 = vperm.xlu1 %789, %v795_v33  }
 0x346   : > { %v506_v37 = vpop.f32.mrb[0].mxu1 }
 0x347   : > { %v510_v38 = vadd.f32 %v506_v37, %v436_v36  ;;  %v704_v39 = vpop.f32.mrb[1].mxu1 }
 0x349   : > { %511 = vst.msk [vmem:[#allocation4] sm:$0xff] %vm307_vm0, %v510_v38 }
 0x350   : > { %v516_v40 = vld [vmem:[#allocation4] sm:$0xff] }
 0x396   : > { %v522_v41 = vpop.permute.xlu1 %521 }
 0x397   : > { %v524_v42 = vmul.f32 %v522_v41, %v516_v40 }
 0x399   : > { %526 = vrot.lane.b32.xlu1 %v524_v42, %s979_s12 }
 0x40b   : > { %v527_v43 = vpop.permute.xlu1 %526 }
 0x40c   : > { %v529_v44 = vsel %vm307_vm0, %v1208_v2, %v527_v43 }
 0x40d   : > { %531 = vst.msk [vmem:[%s293_s13] sm:$0xff] %vm530_vm6, %v529_v44 }
 0x40e   : > { %897 = shalt.err (!%p894_p9)
}
 0x40f   : > { %s898_s29 = scalar_lea.hbm %s1231_s24, 128  ;;  %s902_s14 = scalar_lea.hbm %s1287_s4, 256 }
 0x410   : > { %p899_p8 = scmp.ne.s32.totalorder %s1231_s24, %s898_s29  ;;  %p903_p13 = scmp.lt.u32.totalorder %s1231_s24, %s1287_s4 }
 0x411   : > { %p904_p11 = scmp.lt.u32.totalorder %s902_s14, %s898_s29  ;;  %p906_p1 = scmp.lt.u32.totalorder %s898_s29, %s1231_s24 }
 0x412   : > { %p900_p6 = pnand %p899_p8, %p1308_p2 }
 0x413   : > { %p905_p10 = por %p904_p11, %p903_p13 }
 0x414   : > { %p901_p7 = pneg %p900_p6 }
 0x415   : > { %p907_p12 = por %p906_p1, %p905_p10 }
 0x417   : > { %p908_p0 = pnand %p907_p12, %p901_p7 }
 0x419   : > { %911 = shalt.err (!%p908_p0)
}
 0x41a   : > { %713 = dma.vmem_to_hbm [thread:$0]  (%p1308_p2), %s1233_s25, 128, %s1231_s24, %s533_s18  }
 0x41b PF: > { %s558_s12 = sand.u32 1, %s950_s15   ;;  %p1309_p3 = scmp.ne.s32.totalorder %s1298_s8, 0 }
 0x41c   : > { %p1310_p4 = scmp.ge.s32.totalorder %s970_s20, 2  ;;  %s559_s9 = scalar_lea.sflag [#allocation7], %s558_s12 }
 0x41e   : > { %p727_p5 = pnand %p1310_p4, %p1309_p3 }
 0x420   : > { %945 = dma.done.wait (!%p727_p5), %s559_s9, 128  }
 0x421   : > { %947 = vsyncadd (!%p727_p5), %s559_s9, 4294967168  ;;  %s21_s20 = sadd.s32 1, %s970_s20   ;;  %s1311_s15 = smov %s954_s16 }
 0x422   : > { %p18_p9 = scmp.ge.s32.totalorder %s21_s20, 4   ;;  %s1312_s16 = smov %s958_s17 }
 0x423   : > { %s1313_s17 = smov %s1054_s27  ;;  %s1314_s18 = smov %s966_s19 }
 0x424   : > { %s1315_s19 = smov %s1317_s21  ;;  %20 = sbr.rel (!%p18_p9) target bundleno = 9 (0x9), region = 108 }
 0x42b   :  { %564 = vsyncpa [#allocation6], 1 }
 0x42c   :  { %566 = vsyncpa [#allocation6 + $0x1], 1 }
 0x42d   :  { %567 = vsyncpa [#allocation9], 1 }
 0x42e   :  { %569 = vsyncpa [#allocation9 + $0x1], 1 }
 0x42f   :  { %570 = vsyncpa [#allocation7], 1 }
 0x430   :  { %572 = vsyncpa [#allocation7 + $0x1], 1 }

</bundles_post_ra>
